<compile_context>
chip_gen: v5e
topology: v5e:2x2
jax: 0.10.0
libtpu: 0.0.40
codegen_flags: <defaults>
</compile_context>

<pallas_src>
import jax
import jax.numpy as jnp
from jax.experimental import pallas as pl
from jax.experimental.pallas import tpu as pltpu


def _embedder_kernel(cat0_ref, cat1_ref, cont_ref, t0_ref, t1_ref, wc_ref, b_ref,
                     out_ref):
    bt = cat0_ref.shape[0]
    V0 = t0_ref.shape[0]
    V1 = t1_ref.shape[0]

    ids0 = cat0_ref[...]                       # [bt, 1] int32
    ids1 = cat1_ref[...]                       # [bt, 1] int32
    cont = cont_ref[...]                       # [bt, nc_pad] f32

    # embedding-0 lookup fused with its slice of the combiner:
    # onehot0 @ (emb0 @ W0) == Linear-slice of Embedding_0(ids0)
    iota0 = jax.lax.broadcasted_iota(jnp.int32, (bt, V0), 1)
    onehot0 = (iota0 == ids0).astype(jnp.float32)
    z = jnp.dot(onehot0, t0_ref[...], preferred_element_type=jnp.float32)

    # embedding-1 lookup fused with its slice of the combiner
    iota1 = jax.lax.broadcasted_iota(jnp.int32, (bt, V1), 1)
    onehot1 = (iota1 == ids1).astype(jnp.float32)
    z = z + jnp.dot(onehot1, t1_ref[...], preferred_element_type=jnp.float32)

    # continuous slice of the combiner + bias
    z = z + jnp.dot(cont, wc_ref[...], preferred_element_type=jnp.float32)
    z = z + b_ref[...]

    # leaky_relu(z, 0.5)  (slope < 1 so max(z, 0.5 z) is exact)
    out_ref[...] = jnp.maximum(z, 0.5 * z)


def data_source_embedder(cat_ids, emb0, emb1, cont, w_t, b, *, b_tile=512,
                         vmem_limit_bytes=None):
    """cat_ids: [B,2] int, emb0: [V0,E], emb1: [V1,E], cont: [B,n_cont],
    w_t: [2E+n_cont, E] (nn.Linear weight transposed), b: [E] or [1,E].

    b_tile: batch rows per grid step (multiple of 8). Sweep 256-1024 on
    v6e (128 MiB VMEM); use roughly half / set vmem_limit_bytes on v7x (64 MiB)."""
    B = cat_ids.shape[0]
    V0, E = emb0.shape
    V1 = emb1.shape[0]
    n_cont = cont.shape[1]

    # ---- glue outside the kernel: fold the combiner Linear into the tables ----
    t0 = jnp.dot(emb0, w_t[:E], preferred_element_type=jnp.float32)        # [V0, E]
    t1 = jnp.dot(emb1, w_t[E:2 * E], preferred_element_type=jnp.float32)   # [V1, E]
    wc = w_t[2 * E:]                                                       # [n_cont, E]
    b2d = jnp.asarray(b, jnp.float32).reshape(1, E)

    # pad the continuous feature dim (matmul K) to a multiple of 8 sublanes
    nc_pad = max(8, ((n_cont + 7) // 8) * 8)
    cont = cont.astype(jnp.float32)
    if nc_pad != n_cont:
        cont = jnp.pad(cont, ((0, 0), (0, nc_pad - n_cont)))
        wc = jnp.pad(wc, ((0, nc_pad - n_cont), (0, 0)))

    # split id columns into lane-clean [B,1] operands
    cat0 = cat_ids[:, 0:1].astype(jnp.int32)
    cat1 = cat_ids[:, 1:2].astype(jnp.int32)

    # pad batch to a multiple of the batch tile
    bt = min(b_tile, max(8, ((B + 7) // 8) * 8))
    B_pad = ((B + bt - 1) // bt) * bt
    if B_pad != B:
        pad = ((0, B_pad - B), (0, 0))
        cat0 = jnp.pad(cat0, pad)          # id 0 is always in-range
        cat1 = jnp.pad(cat1, pad)
        cont = jnp.pad(cont, pad)

    grid = (B_pad // bt,)

    flops = 2 * B_pad * E * (V0 + V1 + nc_pad) + 4 * B_pad * E
    bytes_accessed = 4 * (B_pad * (2 + nc_pad + E) + (V0 + V1 + nc_pad + 1) * E)
    cost = pl.CostEstimate(flops=flops, transcendentals=0,
                           bytes_accessed=bytes_accessed)

    out = pl.pallas_call(
        _embedder_kernel,
        out_shape=jax.ShapeDtypeStruct((B_pad, E), jnp.float32),
        grid=grid,
        in_specs=[
            pl.BlockSpec((bt, 1), lambda i: (i, 0)),          # cat0  (streamed)
            pl.BlockSpec((bt, 1), lambda i: (i, 0)),          # cat1  (streamed)
            pl.BlockSpec((bt, nc_pad), lambda i: (i, 0)),     # cont  (streamed)
            pl.BlockSpec((V0, E), lambda i: (0, 0)),          # T0    (resident)
            pl.BlockSpec((V1, E), lambda i: (0, 0)),          # T1    (resident)
            pl.BlockSpec((nc_pad, E), lambda i: (0, 0)),      # Wc    (resident)
            pl.BlockSpec((1, E), lambda i: (0, 0)),           # bias  (resident)
        ],
        out_specs=pl.BlockSpec((bt, E), lambda i: (i, 0)),
        compiler_params=pltpu.CompilerParams(
            dimension_semantics=("parallel",),
            vmem_limit_bytes=vmem_limit_bytes,
        ),
        cost_estimate=cost,
    )(cat0, cat1, cont, t0, t1, wc, b2d)
    return out[:B]


def _reference(cat_ids, emb0, emb1, cont, w_t, b):
    """Pure-JAX reference matching the original module exactly."""
    e0 = emb0[cat_ids[:, 0]]
    e1 = emb1[cat_ids[:, 1]]
    concat = jnp.concatenate([e0, e1, cont], axis=1)
    z = concat @ w_t + b.reshape(1, -1)
    return jnp.where(z >= 0, z, 0.5 * z)


if __name__ == "__main__":
    # Synthetic DataSource: 2 categorical columns (vocab 7 and 5),
    # 3 continuous columns, embedding_size = 32, batch = 8.
    B, E, V0, V1, NCONT = 8, 32, 7, 5, 3
    TOT = 2 * E + NCONT

    key = jax.random.PRNGKey(0)
    k_e0, k_e1, k_w, k_b, k_cat0, k_cat1, k_cont = jax.random.split(key, 7)

    # Deterministic parameter init (shapes per the module's __init__).
    emb0 = jax.random.normal(k_e0, (V0, E), jnp.float32) * 0.1   # nn.Embedding(V0, E)
    emb1 = jax.random.normal(k_e1, (V1, E), jnp.float32) * 0.1   # nn.Embedding(V1, E)
    w = jax.random.normal(k_w, (E, TOT), jnp.float32) * 0.1      # nn.Linear(TOT, E).weight
    b = jax.random.normal(k_b, (E,), jnp.float32) * 0.1          # nn.Linear(TOT, E).bias
    w_t = w.T                                                    # [TOT, E], glue transpose

    # Example inputs ("inds" select rows of the DataSource tables).
    cat0 = jax.random.randint(k_cat0, (B,), 0, V0, jnp.int32)
    cat1 = jax.random.randint(k_cat1, (B,), 0, V1, jnp.int32)
    cat_ids = jnp.stack([cat0, cat1], axis=1)                    # [B, 2]
    cont = jax.random.normal(k_cont, (B, NCONT), jnp.float32)    # [B, 3]

    out = data_source_embedder(cat_ids, emb0, emb1, cont, w_t, b)
    out = jax.block_until_ready(out)

    ref = _reference(cat_ids, emb0, emb1, cont, w_t, b)
    assert out.shape == (B, E)
    assert jnp.allclose(out, ref, atol=1e-5, rtol=1e-5)

    print("KERNEL_OK")
</pallas_src>

<mosaic_0001>
module attributes {stable_mosaic.version = 11 : i64} {
  func.func @_embedder_kernel(%arg0: i32, %arg1: memref<8x1xi32, #tpu.memory_space<vmem>>, %arg2: memref<8x1xi32, #tpu.memory_space<vmem>>, %arg3: memref<8x8xf32, #tpu.memory_space<vmem>>, %arg4: memref<7x32xf32, #tpu.memory_space<vmem>>, %arg5: memref<5x32xf32, #tpu.memory_space<vmem>>, %arg6: memref<8x32xf32, #tpu.memory_space<vmem>>, %arg7: memref<1x32xf32, #tpu.memory_space<vmem>>, %arg8: memref<8x32xf32, #tpu.memory_space<vmem>>) attributes {dimension_semantics = [#tpu.dimension_semantics<parallel>], iteration_bounds = array<i64: 1>, scalar_prefetch = 0 : i64, scratch_operands = 0 : i64, tpu.core_type = #tpu.core_type<tc>, window_params = [{transform_indices = @transform_0, window_bounds = array<i64: 8, 1>}, {transform_indices = @transform_1, window_bounds = array<i64: 8, 1>}, {transform_indices = @transform_2, window_bounds = array<i64: 8, 8>}, {pipeline_mode = #tpu.pipeline_mode<synchronous>, transform_indices = @transform_3, window_bounds = array<i64: 7, 32>}, {pipeline_mode = #tpu.pipeline_mode<synchronous>, transform_indices = @transform_4, window_bounds = array<i64: 5, 32>}, {pipeline_mode = #tpu.pipeline_mode<synchronous>, transform_indices = @transform_5, window_bounds = array<i64: 8, 32>}, {pipeline_mode = #tpu.pipeline_mode<synchronous>, transform_indices = @transform_6, window_bounds = array<i64: 1, 32>}, {transform_indices = @transform_7, window_bounds = array<i64: 8, 32>}]} {
    %c0 = arith.constant 0 : index
    %c0_0 = arith.constant 0 : index
    %0 = vector.load %arg1[%c0, %c0_0] : memref<8x1xi32, #tpu.memory_space<vmem>>, vector<8x1xi32>
    %c0_1 = arith.constant 0 : index
    %c0_2 = arith.constant 0 : index
    %1 = vector.load %arg2[%c0_1, %c0_2] : memref<8x1xi32, #tpu.memory_space<vmem>>, vector<8x1xi32>
    %c0_3 = arith.constant 0 : index
    %c0_4 = arith.constant 0 : index
    %2 = vector.load %arg3[%c0_3, %c0_4] : memref<8x8xf32, #tpu.memory_space<vmem>>, vector<8x8xf32>
    %3 = tpu.iota {dimensions = array<i32: 1>} : vector<8x7xi32>
    %4 = vector.broadcast %0 : vector<8x1xi32> to vector<8x7xi32>
    %5 = arith.cmpi eq, %3, %4 : vector<8x7xi32>
    %6 = arith.extui %5 : vector<8x7xi1> to vector<8x7xi32>
    %7 = arith.sitofp %6 : vector<8x7xi32> to vector<8x7xf32>
    %c0_5 = arith.constant 0 : index
    %c0_6 = arith.constant 0 : index
    %8 = vector.load %arg4[%c0_5, %c0_6] : memref<7x32xf32, #tpu.memory_space<vmem>>, vector<7x32xf32>
    %cst = arith.constant dense<0.000000e+00> : vector<8x32xf32>
    %9 = tpu.matmul %7, %8, %cst {dimension_numbers = #tpu.dot_dimension_numbers<[1], [0], [0], [1], [0, 0, 1, 1], [], []>} : vector<8x7xf32>, vector<7x32xf32>, vector<8x32xf32> -> vector<8x32xf32>
    %10 = tpu.iota {dimensions = array<i32: 1>} : vector<8x5xi32>
    %11 = vector.broadcast %1 : vector<8x1xi32> to vector<8x5xi32>
    %12 = arith.cmpi eq, %10, %11 : vector<8x5xi32>
    %13 = arith.extui %12 : vector<8x5xi1> to vector<8x5xi32>
    %14 = arith.sitofp %13 : vector<8x5xi32> to vector<8x5xf32>
    %c0_7 = arith.constant 0 : index
    %c0_8 = arith.constant 0 : index
    %15 = vector.load %arg5[%c0_7, %c0_8] : memref<5x32xf32, #tpu.memory_space<vmem>>, vector<5x32xf32>
    %cst_9 = arith.constant dense<0.000000e+00> : vector<8x32xf32>
    %16 = tpu.matmul %14, %15, %cst_9 {dimension_numbers = #tpu.dot_dimension_numbers<[1], [0], [0], [1], [0, 0, 1, 1], [], []>} : vector<8x5xf32>, vector<5x32xf32>, vector<8x32xf32> -> vector<8x32xf32>
    %17 = arith.addf %9, %16 : vector<8x32xf32>
    %c0_10 = arith.constant 0 : index
    %c0_11 = arith.constant 0 : index
    %18 = vector.load %arg6[%c0_10, %c0_11] : memref<8x32xf32, #tpu.memory_space<vmem>>, vector<8x32xf32>
    %cst_12 = arith.constant dense<0.000000e+00> : vector<8x32xf32>
    %19 = tpu.matmul %2, %18, %cst_12 {dimension_numbers = #tpu.dot_dimension_numbers<[1], [0], [0], [1], [0, 0, 1, 1], [], []>} : vector<8x8xf32>, vector<8x32xf32>, vector<8x32xf32> -> vector<8x32xf32>
    %20 = arith.addf %17, %19 : vector<8x32xf32>
    %c0_13 = arith.constant 0 : index
    %c0_14 = arith.constant 0 : index
    %21 = vector.load %arg7[%c0_13, %c0_14] : memref<1x32xf32, #tpu.memory_space<vmem>>, vector<1x32xf32>
    %22 = vector.broadcast %21 : vector<1x32xf32> to vector<8x32xf32>
    %23 = arith.addf %20, %22 : vector<8x32xf32>
    %cst_15 = arith.constant 5.000000e-01 : f32
    %24 = vector.broadcast %cst_15 : f32 to vector<8x32xf32>
    %25 = arith.mulf %24, %23 : vector<8x32xf32>
    %26 = arith.maximumf %23, %25 : vector<8x32xf32>
    %c0_16 = arith.constant 0 : index
    %c0_17 = arith.constant 0 : index
    %27 = vector.load %arg8[%c0_16, %c0_17] : memref<8x32xf32, #tpu.memory_space<vmem>>, vector<8x32xf32>
    tpu.vector_store %arg8[%c0_16, %c0_17], %26 {strides = array<i32>} : memref<8x32xf32, #tpu.memory_space<vmem>>, vector<8x32xf32>,
    return
  }
  func.func @transform_0(%arg0: i32) -> (i32, i32) {
    %c0_i32 = arith.constant 0 : i32
    %c0_i32_0 = arith.constant 0 : i32
    return %arg0, %c0_i32 : i32, i32
  }
  func.func @transform_1(%arg0: i32) -> (i32, i32) {
    %c0_i32 = arith.constant 0 : i32
    %c0_i32_0 = arith.constant 0 : i32
    return %arg0, %c0_i32 : i32, i32
  }
  func.func @transform_2(%arg0: i32) -> (i32, i32) {
    %c0_i32 = arith.constant 0 : i32
    %c0_i32_0 = arith.constant 0 : i32
    return %arg0, %c0_i32 : i32, i32
  }
  func.func @transform_3(%arg0: i32) -> (i32, i32) {
    %c0_i32 = arith.constant 0 : i32
    %c0_i32_0 = arith.constant 0 : i32
    %c0_i32_1 = arith.constant 0 : i32
    return %c0_i32, %c0_i32_0 : i32, i32
  }
  func.func @transform_4(%arg0: i32) -> (i32, i32) {
    %c0_i32 = arith.constant 0 : i32
    %c0_i32_0 = arith.constant 0 : i32
    %c0_i32_1 = arith.constant 0 : i32
    return %c0_i32, %c0_i32_0 : i32, i32
  }
  func.func @transform_5(%arg0: i32) -> (i32, i32) {
    %c0_i32 = arith.constant 0 : i32
    %c0_i32_0 = arith.constant 0 : i32
    %c0_i32_1 = arith.constant 0 : i32
    return %c0_i32, %c0_i32_0 : i32, i32
  }
  func.func @transform_6(%arg0: i32) -> (i32, i32) {
    %c0_i32 = arith.constant 0 : i32
    %c0_i32_0 = arith.constant 0 : i32
    %c0_i32_1 = arith.constant 0 : i32
    return %c0_i32, %c0_i32_0 : i32, i32
  }
  func.func @transform_7(%arg0: i32) -> (i32, i32) {
    %c0_i32 = arith.constant 0 : i32
    %c0_i32_0 = arith.constant 0 : i32
    return %arg0, %c0_i32 : i32, i32
  }
}

</mosaic_0001>

<bundles_post_ra>
// kernel: tpu_custom_call.1
= control target key start
LH: loop header
LB: loop body
LE: loop exit
PB: predicated region body
PF: predicated region fallthrough
CT: control target
= control target key end

     0   :  { %12 = vsyncpa [#allocation3], 0  ;;  %s344_s0 = inlined_call_operand.vmem [shape: s32[8,1], index: 0, kind: input, shape index: {}]   ;;  %s345_s1 = inlined_call_operand.vmem [shape: s32[8,1], index: 1, kind: input, shape index: {}]   ;;  %s346_s2 = inlined_call_operand.vmem [shape: f32[8,8], index: 2, kind: input, shape index: {}]   ;;  %s347_s3 = inlined_call_operand.vmem [shape: f32[7,32], index: 3, kind: input, shape index: {}]   ;;  %s348_s4 = inlined_call_operand.hbm [shape: f32[5,32], index: 4, kind: input, shape index: {}]   ;;  %s349_s5 = inlined_call_operand.hbm [shape: f32[8,32], index: 5, kind: input, shape index: {}]   ;;  %s350_s6 = inlined_call_operand.vmem [shape: f32[1,32], index: 6, kind: input, shape index: {}]   ;;  %s351_s7 = inlined_call_operand.hbm [shape: f32[8,32], index: 7, kind: output, shape index: {}]  }
   0x1   :  { %13 = vsyncpa [#allocation6], 0 }
   0x2   :  { %14 = vsyncpa [#allocation4], 0  ;;  %s28_s26 = sshll.u32 %s348_s4, 4  ;;  %s275_s27 = smov [#allocation2]   ;;  %s29_s26 = int_to_ptr.hbm [resolvable:$true] %s28_s26 }
   0x3   :  { %s30_s28 = sshll.u32 %s275_s27, 4  ;;  %s39_s8 = sshll.u32 %s349_s5, 4  ;;  %s31_s28 = int_to_ptr.vmem [resolvable:$true] %s30_s28  ;;  %s40_s8 = int_to_ptr.hbm [resolvable:$true] %s39_s8 }
   0x4   :  { %33 = dma.hbm_to_vmem [thread:$0]  %s29_s26, 128, %s31_s28, [#allocation3]  }
   0x5   :  { %s276_s9 = smov [#allocation5]  }
   0x6   :  { %s41_s10 = sshll.u32 %s276_s9, 4  ;;  %s42_s10 = int_to_ptr.vmem [resolvable:$true] %s41_s10 }
   0x7   :  { %44 = dma.hbm_to_vmem [thread:$0]  %s40_s8, 128, %s42_s10, [#allocation6]  }
   0x8   :  { %269 = dma.done.wait [#allocation3], 128  }
   0x9   :  { %270 = vsyncadd [#allocation3], 4294967168 }
   0xa   :  { %271 = dma.done.wait [#allocation6], 128  }
   0xb   :  { %272 = vsyncadd [#allocation6], 4294967168  ;;  %v277_v0 = vmov 0   ;;  %v55_v1 = vld [vmem:[%s344_s0] sm:$0xff]  ;;  %vm106_vm0 = vcmask 1046528   ;;  %v130_v4 = vld [vmem:[#allocation5] sm:$0xff]  ;;  %v58_v7 = vlaneseq }
   0xc   :  { %195 = vset.pattern.permute.xlu0 %v277_v0  ;;  %v56_v2 = vld [vmem:[%s345_s1] sm:$0xff]  ;;  %vm131_vm1 = vcmask 64512   ;;  %150 = vmatpush.msra.mxu2 %v130_v4  ;;  %vm78_vm2 = vcmask 1044480   ;;  %vm102_vm3 = vcmask 56320   ;;  %v278_v10 = vmov 0.0   ;;  %s172_s19 = sshll.u32 %s351_s7, 4  ;;  %s173_s19 = int_to_ptr.hbm [resolvable:$true] %s172_s19 }
   0xd   :  { %61 = vperm.xlu0 %195, %v55_v1   ;;  %v66_v3 = vld [vmem:[%s347_s3] sm:$0x7f]  ;;  %v59_v8 = vand.u32 127, %v58_v7  ;;  %vm74_vm5 = vcmask 39936   ;;  %vm163_vm7 = vcmask 261120  }
   0xe   :  { %187 = vmatpush.msk.msra.mxu1 %vm106_vm0, %v66_v3  ;;  %v57_v5 = vld [vmem:[%s346_s2] sm:$0xff]  ;;  %s279_s2 = smov [#allocation7]  }
   0xf   :  { %189 = vmatmul.msk.f32.vlgmr.msra.gmra.mxu2 %vm131_vm1, %v57_v5  ;;  %v73_v6 = vld [vmem:[#allocation2] sm:$0x1f]  ;;  %s170_s3 = sshll.u32 %s279_s2, 4  ;;  %s171_s3 = int_to_ptr.vmem [resolvable:$true] %s170_s3 }
  0x10   :  { %185 = vmatpush.msk.msra.mxu0 %vm78_vm2, %v73_v6  ;;  %v196_v18 = vld [vmem:[%s350_s6] ss:$0 sm:$0xff] }
  0x15   :  { %68 = vperm.xlu0 %195, %v56_v2  }
  0x7f   :  { %v62_v9 = vpop.permute.xlu0 %61 }
  0x80   :  { %vm63_vm4 = vcmp.eq.s32.totalorder %v59_v8, %v62_v9 }
  0x81   :  { %v183_v11 = vsel %vm63_vm4, 1.0, %v278_v10 }
  0x82   :  { %188 = vmatmul.msk.f32.vlgmr.msra.gmra.mxu1 %vm102_vm3, %v183_v11 }
  0x87   :  { %v69_v12 = vpop.permute.xlu0 %68 }
  0x88   :  { %vm70_vm6 = vcmp.eq.s32.totalorder %v59_v8, %v69_v12 }
  0x89   :  { %v184_v13 = vsel %vm70_vm6, 1.0, %v278_v10 }
  0x8a   :  { %186 = vmatmul.msk.f32.vlgmr.msra.gmra.mxu0 %vm74_vm5, %v184_v13 }
  0x92   :  { %v152_v14 = vpop.f32.mrf.mxu2 }
  0xff   :  { %v127_v15 = vpop.f32.mrf.mxu1 }
 0x107   :  { %v99_v16 = vpop.f32.mrf.mxu0 }
 0x108   :  { %v128_v17 = vadd.f32 %v127_v15, %v99_v16 }
 0x10a   :  { %v155_v19 = vadd.f32 %v152_v14, %v128_v17 }
 0x10c   :  { %v160_v20 = vadd.f32 %v196_v18, %v155_v19 }
 0x10e   :  { %v161_v21 = vmul.f32 0.5, %v160_v20 }
 0x110   :  { %v162_v22 = vmax.f32 %v160_v20, %v161_v21 }
 0x112   :  { %164 = vst.msk [vmem:[#allocation7] sm:$0xff] %vm163_vm7, %v162_v22 }
 0x113   :  { %175 = dma.vmem_to_hbm [thread:$0]  %s171_s3, 128, %s173_s19, [#allocation4]  }
 0x114   :  { %273 = dma.done.wait [#allocation4], 128  }
 0x115   :  { %274 = vsyncadd [#allocation4], 4294967168 }
 0x116   :  { %180 = vsyncpa [#allocation3], 1 }
 0x117   :  { %181 = vsyncpa [#allocation6], 1 }
 0x118   :  { %182 = vsyncpa [#allocation4], 1 }

</bundles_post_ra>
